<compile_context>
chip_gen: v7x
topology: tpu7x:2x2x1
jax: 0.10.0
libtpu: 0.0.40
codegen_flags: <defaults>
</compile_context>

<pallas_src>
import functools

import jax
import jax.numpy as jnp
from jax import lax
from jax.experimental import pallas as pl
from jax.experimental.pallas import tpu as pltpu


LANE = 128


def _round_up(x, m):
    return (x + m - 1) // m * m


def _sublane(dtype):
    # second-minor tile size: 8 for f32, 16 for bf16.
    return 32 // jnp.dtype(dtype).itemsize


def _vmem_capacity_bytes():
    try:
        info = pltpu.get_tpu_info()
        cap = getattr(info, "vmem_capacity_bytes", None)
        if cap:
            return int(cap)
    except Exception:
        pass
    return 64 * 2**20  # conservative default (v7x per-TensorCore)


def _padded_block_bytes(shape2d, dtype):
    """Rough VMEM footprint of one 2-D-ish block (lane dim -> 128, sublane dim -> 8/16)."""
    itemsize = jnp.dtype(dtype).itemsize
    dims = list(shape2d)
    dims[-1] = _round_up(dims[-1], LANE)
    if len(dims) >= 2:
        dims[-2] = _round_up(dims[-2], _sublane(dtype))
    n = 1
    for d in dims:
        n *= int(d)
    return n * itemsize


# ----------------------------- Kernel bodies ---------------------------------

def _epilogue(acc, b_ref, o_ref, *, hw_valid, eps, negative_slope, normalize, mask=None):
    """InstanceNorm (optional) + LeakyReLU on an f32 [rows, CT] accumulator, store to o_ref."""
    if normalize:
        if mask is not None:
            acc = acc * mask                     # zero padded output columns (stats stay exact)
        inv_hw = 1.0 / hw_valid
        # Single-pass moments (one square pass + two XLU reductions).
        # TODO(synk): switch to a centered second pass / Welford if tolerances ever tighten.
        mean = jnp.sum(acc, axis=0, keepdims=True) * inv_hw
        mean_sq = jnp.sum(acc * acc, axis=0, keepdims=True) * inv_hw
        var = jnp.maximum(mean_sq - mean * mean, 0.0)
        acc = (acc - mean) * lax.rsqrt(var + eps)
    else:
        acc = acc + b_ref[...]                   # [1, CT] broadcast
    o_ref[0] = jnp.where(acc > 0, acc, negative_slope * acc).astype(o_ref.dtype)


def _fold_kernel(*refs, eps, negative_slope, normalize):
    """Small-Cin path: x is tap-folded im2col [1, HW, 9*Cin]; one matmul per (b, cout-tile)."""
    if normalize:
        x_ref, w_ref, o_ref = refs
        b_ref = None
    else:
        x_ref, w_ref, b_ref, o_ref = refs
    hw = x_ref.shape[1]
    acc = jnp.dot(x_ref[0], w_ref[...], preferred_element_type=jnp.float32)   # [HW, CT] f32
    _epilogue(acc, b_ref, o_ref, hw_valid=hw, eps=eps,
              negative_slope=negative_slope, normalize=normalize)


def _taps_kernel(*refs, ho, wo, wo_pad, eps, negative_slope, normalize):
    """General path: phase-split input, 9 per-tap matmuls accumulated in a VMEM f32 scratch."""
    if normalize:
        xph_ref, w_ref, o_ref, acc_ref = refs
        b_ref = None
    else:
        xph_ref, w_ref, b_ref, o_ref, acc_ref = refs

    cin = xph_ref.shape[-1]
    hs = xph_ref.shape[1] // 4
    hw_pad = ho * wo_pad
    ct = o_ref.shape[-1]

    for tap in range(9):
        ky, kx = tap // 3, tap % 3
        p = (ky % 2) * 2 + (kx % 2)              # stride-2 phase of this tap
        r0 = p * hs + ky // 2                    # row offset inside the phase block
        c0 = kx // 2                             # col offset inside the phase block
        # [ho, wo_pad, cin] window; wo_pad is a sublane multiple so the flatten below is a
        # free view (no relayout copy) and stays in the streaming dtype (no f32 bounce).
        lhs = xph_ref[0, r0:r0 + ho, c0:c0 + wo_pad, :].reshape(hw_pad, cin)
        part = jnp.dot(lhs, w_ref[tap], preferred_element_type=jnp.float32)
        if tap == 0:
            acc_ref[...] = part                  # first tap: no separate zero-init pass
        else:
            acc_ref[...] += part                 # VMEM accumulate (MRB in-place on v7x)

    mask = None
    if normalize and wo_pad != wo:
        # Only padded output columns carry garbage; exclude them from the stats.
        col = lax.broadcasted_iota(jnp.int32, (ho, wo_pad, ct), 1)
        mask = (col < wo).astype(jnp.float32).reshape(hw_pad, ct)

    _epilogue(acc_ref[...], b_ref, o_ref, hw_valid=ho * wo, eps=eps,
              negative_slope=negative_slope, normalize=normalize, mask=mask)


# ------------------------------- Wrapper --------------------------------------

def dis_block(x_nchw, weight, bias=None, *, normalize=True, eps=1e-5,
              negative_slope=0.2, compute_dtype=jnp.bfloat16, out_dtype=None,
              return_nhwc=False):
    """Forward pass of Dis_block.

    x_nchw : [B, Cin, H, W]    (PyTorch NCHW layout)
    weight : [Cout, Cin, 3, 3] (PyTorch conv weight layout)
    bias   : [Cout]            (ignored when normalize=True: cancels under InstanceNorm)
    returns: [B, Cout, H//2, W//2]   (or NHWC [B, H//2, W//2, Cout] if return_nhwc=True)
    """
    B, Cin, H, W = x_nchw.shape
    Cout = weight.shape[0]
    assert weight.shape == (Cout, Cin, 3, 3)
    assert H % 2 == 0 and W % 2 == 0, "k=3/s=2/p=1 path expects even spatial dims"
    if not normalize:
        assert bias is not None

    out_dtype = compute_dtype if out_dtype is None else out_dtype
    csize = jnp.dtype(compute_dtype).itemsize
    Ho, Wo = H // 2, W // 2
    HW = Ho * Wo
    Cout_p = _round_up(Cout, LANE)

    x_nhwc = jnp.transpose(x_nchw, (0, 2, 3, 1))
    xp = jnp.pad(x_nhwc, ((0, 0), (1, 1), (1, 1), (0, 0)))        # conv zero padding

    fold_taps = (9 * Cin) <= LANE

    if fold_taps:
        # First-layer / small-Cin case: tap-fold im2col in the wrapper.  K = 9*Cin <= 128
        # (one lane tile) -> single [HW, K] x [K, CT] matmul in the kernel.
        K = 9 * Cin
        taps = [xp[:, ky:ky + 2 * Ho:2, kx:kx + 2 * Wo:2, :]
                for ky in range(3) for kx in range(3)]             # 9 x [B, Ho, Wo, Cin]
        xin = jnp.concatenate(taps, axis=-1).reshape(B, HW, K).astype(compute_dtype)
        w_in = jnp.transpose(weight, (2, 3, 1, 0)).reshape(K, Cout)
        w_in = jnp.pad(w_in, ((0, 0), (0, Cout_p - Cout))).astype(compute_dtype)
        Wo_pad, HW_pad = Wo, HW
        Hs = Ho + 1  # unused
    else:
        # General case: stride-2 phase split (~input-sized, no 9x HBM im2col).  Pad Wo to a
        # sublane multiple so the in-kernel per-tap flatten is a free view.
        sub = _sublane(compute_dtype)
        Wo_pad = _round_up(Wo, sub)
        d = Wo_pad - Wo
        Hs, Ws_p = Ho + 1, Wo_pad + 1
        xpp = jnp.pad(xp, ((0, 0), (0, 0), (0, 2 * d), (0, 0)))    # extra zero cols on the right
        phases = [xpp[:, py::2, px::2, :] for py in range(2) for px in range(2)]
        xin = jnp.stack(phases, axis=1).reshape(B, 4 * Hs, Ws_p, Cin).astype(compute_dtype)
        w_in = jnp.transpose(weight, (2, 3, 1, 0)).reshape(9, Cin, Cout)
        w_in = jnp.pad(w_in, ((0, 0), (0, 0), (0, Cout_p - Cout))).astype(compute_dtype)
        HW_pad = Ho * Wo_pad

    # Cout tile: 128 by default; 256 on wide layers when the f32 accumulator stays small.
    if Cout_p % 256 == 0 and HW_pad * 256 * 4 <= 8 * 2**20:
        CT = 256
    else:
        CT = 128
    n_ct = Cout_p // CT

    if fold_taps:
        in_specs = [
            pl.BlockSpec((1, HW, 9 * Cin), lambda b, j: (b, 0, 0)),
            pl.BlockSpec((9 * Cin, CT), lambda b, j: (0, j)),
        ]
        kernel = functools.partial(_fold_kernel, eps=eps,
                                   negative_slope=negative_slope, normalize=normalize)
        scratch_shapes = []
        x_blk = _padded_block_bytes((HW, 9 * Cin), compute_dtype)
        w_blk = _padded_block_bytes((9 * Cin, CT), compute_dtype)
        acc_blk = 0
    else:
        in_specs = [
            pl.BlockSpec((1, 4 * Hs, Wo_pad + 1, Cin), lambda b, j: (b, 0, 0, 0)),
            pl.BlockSpec((9, Cin, CT), lambda b, j: (0, 0, j)),
        ]
        kernel = functools.partial(_taps_kernel, ho=Ho, wo=Wo, wo_pad=Wo_pad, eps=eps,
                                   negative_slope=negative_slope, normalize=normalize)
        scratch_shapes = [pltpu.VMEM((HW_pad, CT), jnp.float32)]
        x_blk = (4 * Hs * _round_up(Wo_pad + 1, _sublane(compute_dtype))
                 * _round_up(Cin, LANE) * csize)
        w_blk = 9 * _round_up(Cin, _sublane(compute_dtype)) * CT * csize
        acc_blk = HW_pad * CT * 4

    operands = [xin, w_in]
    if not normalize:
        b_row = jnp.pad(bias.astype(jnp.float32), (0, Cout_p - Cout)).reshape(1, Cout_p)
        in_specs.append(pl.BlockSpec((1, CT), lambda b, j: (0, j)))
        operands.append(b_row)

    out_specs = pl.BlockSpec((1, HW_pad, CT), lambda b, j: (b, 0, j))
    out_shape = jax.ShapeDtypeStruct((B, HW_pad, Cout_p), out_dtype)

    # Generation-aware VMEM budget: double-buffered blocks + accumulator, capped by capacity.
    o_blk = _padded_block_bytes((HW_pad, CT), out_dtype)
    need = 2 * (x_blk + w_blk + o_blk) + acc_blk + 2 * CT * 4
    cap = _vmem_capacity_bytes()
    hard_cap = min(int(0.9 * cap), 100 * 2**20)
    vmem_limit = int(min(max(32 * 2**20, 2 * need), hard_cap))

    cost = pl.CostEstimate(
        flops=2 * B * HW * 9 * Cin * Cout,
        transcendentals=0,
        bytes_accessed=int(xin.size) * csize + int(w_in.size) * csize
                       + B * HW_pad * Cout_p * jnp.dtype(out_dtype).itemsize,
    )

    out = pl.pallas_call(
        kernel,
        out_shape=out_shape,
        grid=(B, n_ct),
        in_specs=in_specs,
        out_specs=out_specs,
        scratch_shapes=scratch_shapes,
        compiler_params=pltpu.CompilerParams(
            dimension_semantics=("parallel", "parallel"),
            vmem_limit_bytes=vmem_limit,
        ),
        cost_estimate=cost,
    )(*operands)

    # Strip lane/sublane padding; [B, HW_pad, Cout_p] -> [B, Ho, Wo, Cout].
    out = out.reshape(B, Ho, Wo_pad, Cout_p)[:, :, :Wo, :Cout]
    if return_nhwc:
        return out
    return jnp.transpose(out, (0, 3, 1, 2))


# ------------------------- Pure-JAX reference (sanity) -------------------------

def dis_block_ref(x_nchw, weight, bias, *, normalize=True, eps=1e-5, negative_slope=0.2):
    y = lax.conv_general_dilated(
        x_nchw.astype(jnp.float32), weight.astype(jnp.float32),
        window_strides=(2, 2), padding=((1, 1), (1, 1)),
        dimension_numbers=("NCHW", "OIHW", "NCHW"),
        precision=lax.Precision.HIGHEST,
    ) + bias.reshape(1, -1, 1, 1)
    if normalize:
        mean = jnp.mean(y, axis=(2, 3), keepdims=True)
        var = jnp.mean((y - mean) ** 2, axis=(2, 3), keepdims=True)
        y = (y - mean) * lax.rsqrt(var + eps)
    return jnp.where(y > 0, y, negative_slope * y)


# ----------------------------------- Main --------------------------------------

if __name__ == "__main__":
    key = jax.random.PRNGKey(0)
    k1, k2, k3, k4, k5, k6 = jax.random.split(key, 6)

    # Small-Cin (tap-fold) path: B=2, Cin=4, 16x16 -> Cout=8.
    B, Cin, H, W, Cout = 2, 4, 16, 16, 8
    x = jax.random.normal(k1, (B, Cin, H, W), dtype=jnp.float32)
    wt = 0.1 * jax.random.normal(k2, (Cout, Cin, 3, 3), dtype=jnp.float32)
    bs = 0.1 * jax.random.normal(k3, (Cout,), dtype=jnp.float32)

    # A) f32 compute / f32 out, normalize=True (strict check of module semantics).
    outA = jax.block_until_ready(dis_block(x, wt, bs, normalize=True, compute_dtype=jnp.float32))
    refA = dis_block_ref(x, wt, bs, normalize=True)
    assert outA.shape == (B, Cout, H // 2, W // 2), outA.shape
    assert jnp.allclose(outA, refA, atol=1e-4, rtol=1e-4), "fold f32 normalize=True mismatch"

    # B) default bf16 streaming + bf16 output (f32 accumulation/epilogue inside the kernel).
    outB = jax.block_until_ready(dis_block(x, wt, bs, normalize=True))
    assert outB.dtype == jnp.bfloat16
    x_bf = x.astype(jnp.bfloat16).astype(jnp.float32)
    w_bf = wt.astype(jnp.bfloat16).astype(jnp.float32)
    refB = dis_block_ref(x_bf, w_bf, bs, normalize=True)
    assert jnp.allclose(outB.astype(jnp.float32), refB, atol=5e-2, rtol=5e-2), \
        "fold bf16 normalize=True mismatch"

    # C) normalize=False branch (conv bias + LeakyReLU only), f32.
    outC = jax.block_until_ready(dis_block(x, wt, bs, normalize=False, compute_dtype=jnp.float32))
    refC = dis_block_ref(x, wt, bs, normalize=False)
    assert jnp.allclose(outC, refC, atol=1e-4, rtol=1e-4), "normalize=False mismatch"

    # General (phase-split, per-tap matmul) path: Cin=16 so 9*Cin > 128.
    B2, Cin2, H2, W2, Cout2 = 1, 16, 16, 16, 8
    x2 = jax.random.normal(k4, (B2, Cin2, H2, W2), dtype=jnp.float32)
    wt2 = 0.1 * jax.random.normal(k5, (Cout2, Cin2, 3, 3), dtype=jnp.float32)
    bs2 = 0.1 * jax.random.normal(k6, (Cout2,), dtype=jnp.float32)

    # D) f32 strict.
    outD = jax.block_until_ready(
        dis_block(x2, wt2, bs2, normalize=True, compute_dtype=jnp.float32))
    refD = dis_block_ref(x2, wt2, bs2, normalize=True)
    assert jnp.allclose(outD, refD, atol=1e-4, rtol=1e-4), "general f32 mismatch"

    # E) bf16 (exercises the Wo sublane padding + InstanceNorm stats mask path).
    outE = jax.block_until_ready(dis_block(x2, wt2, bs2, normalize=True))
    x2_bf = x2.astype(jnp.bfloat16).astype(jnp.float32)
    w2_bf = wt2.astype(jnp.bfloat16).astype(jnp.float32)
    refE = dis_block_ref(x2_bf, w2_bf, bs2, normalize=True)
    assert jnp.allclose(outE.astype(jnp.float32), refE, atol=5e-2, rtol=5e-2), \
        "general bf16 mismatch"

    print("KERNEL_OK")
</pallas_src>

<mosaic_0001>
module attributes {stable_mosaic.version = 11 : i64} {
  func.func @_fold_kernel(%arg0: i32, %arg1: i32, %arg2: memref<1x64x36xf32, #tpu.memory_space<vmem>>, %arg3: memref<36x128xf32, #tpu.memory_space<vmem>>, %arg4: memref<1x64x128xf32, #tpu.memory_space<vmem>>) attributes {dimension_semantics = [#tpu.dimension_semantics<parallel>, #tpu.dimension_semantics<parallel>], iteration_bounds = array<i64: 2, 1>, scalar_prefetch = 0 : i64, scratch_operands = 0 : i64, tpu.core_type = #tpu.core_type<tc>, window_params = [{transform_indices = @transform_0, window_bounds = array<i64: 1, 64, 36>}, {transform_indices = @transform_1, window_bounds = array<i64: 36, 128>}, {transform_indices = @transform_2, window_bounds = array<i64: 1, 64, 128>}]} {
    %c0 = arith.constant 0 : index
    %c0_0 = arith.constant 0 : index
    %c0_1 = arith.constant 0 : index
    %0 = vector.load %arg2[%c0, %c0_0, %c0_1] : memref<1x64x36xf32, #tpu.memory_space<vmem>>, vector<1x64x36xf32>
    %1 = vector.shape_cast %0 : vector<1x64x36xf32> to vector<64x36xf32>
    %c0_2 = arith.constant 0 : index
    %c0_3 = arith.constant 0 : index
    %2 = vector.load %arg3[%c0_2, %c0_3] : memref<36x128xf32, #tpu.memory_space<vmem>>, vector<36x128xf32>
    %cst = arith.constant dense<0.000000e+00> : vector<64x128xf32>
    %3 = tpu.matmul %1, %2, %cst {dimension_numbers = #tpu.dot_dimension_numbers<[1], [0], [0], [1], [0, 0, 1, 1], [], []>} : vector<64x36xf32>, vector<36x128xf32>, vector<64x128xf32> -> vector<64x128xf32>
    %cst_4 = arith.constant dense<0.000000e+00> : vector<128xf32>
    %4 = vector.multi_reduction <add>, %3, %cst_4 [0] : vector<64x128xf32> to vector<128xf32>
    %5 = vector.shape_cast %4 : vector<128xf32> to vector<1x128xf32>
    %cst_5 = arith.constant 1.562500e-02 : f32
    %6 = vector.broadcast %cst_5 : f32 to vector<1x128xf32>
    %7 = arith.mulf %5, %6 : vector<1x128xf32>
    %8 = arith.mulf %3, %3 : vector<64x128xf32>
    %cst_6 = arith.constant dense<0.000000e+00> : vector<128xf32>
    %9 = vector.multi_reduction <add>, %8, %cst_6 [0] : vector<64x128xf32> to vector<128xf32>
    %10 = vector.shape_cast %9 : vector<128xf32> to vector<1x128xf32>
    %cst_7 = arith.constant 1.562500e-02 : f32
    %11 = vector.broadcast %cst_7 : f32 to vector<1x128xf32>
    %12 = arith.mulf %10, %11 : vector<1x128xf32>
    %13 = arith.mulf %7, %7 : vector<1x128xf32>
    %14 = arith.subf %12, %13 : vector<1x128xf32>
    %cst_8 = arith.constant 0.000000e+00 : f32
    %15 = vector.broadcast %cst_8 : f32 to vector<1x128xf32>
    %16 = arith.maximumf %14, %15 : vector<1x128xf32>
    %17 = vector.broadcast %7 : vector<1x128xf32> to vector<64x128xf32>
    %18 = arith.subf %3, %17 : vector<64x128xf32>
    %cst_9 = arith.constant 9.99999974E-6 : f32
    %19 = vector.broadcast %cst_9 : f32 to vector<1x128xf32>
    %20 = arith.addf %16, %19 : vector<1x128xf32>
    %21 = math.rsqrt %20 : vector<1x128xf32>
    %22 = vector.broadcast %21 : vector<1x128xf32> to vector<64x128xf32>
    %23 = arith.mulf %18, %22 : vector<64x128xf32>
    %cst_10 = arith.constant 0.000000e+00 : f32
    %24 = vector.broadcast %cst_10 : f32 to vector<64x128xf32>
    %25 = arith.cmpf ogt, %23, %24 : vector<64x128xf32>
    %cst_11 = arith.constant 2.000000e-01 : f32
    %26 = vector.broadcast %cst_11 : f32 to vector<64x128xf32>
    %27 = arith.mulf %26, %23 : vector<64x128xf32>
    %28 = arith.select %25, %23, %27 : vector<64x128xi1>, vector<64x128xf32>
    %c0_12 = arith.constant 0 : index
    %c0_13 = arith.constant 0 : index
    %c0_14 = arith.constant 0 : index
    %29 = vector.load %arg4[%c0_12, %c0_13, %c0_14] : memref<1x64x128xf32, #tpu.memory_space<vmem>>, vector<1x64x128xf32>
    %30 = vector.shape_cast %29 : vector<1x64x128xf32> to vector<64x128xf32>
    %31 = vector.shape_cast %28 : vector<64x128xf32> to vector<1x64x128xf32>
    tpu.vector_store %arg4[%c0_12, %c0_13, %c0_14], %31 {strides = array<i32>} : memref<1x64x128xf32, #tpu.memory_space<vmem>>, vector<1x64x128xf32>,
    return
  }
  func.func @transform_0(%arg0: i32, %arg1: i32) -> (i32, i32, i32) {
    %c0_i32 = arith.constant 0 : i32
    %c0_i32_0 = arith.constant 0 : i32
    %c0_i32_1 = arith.constant 0 : i32
    return %arg0, %c0_i32, %c0_i32_0 : i32, i32, i32
  }
  func.func @transform_1(%arg0: i32, %arg1: i32) -> (i32, i32) {
    %c0_i32 = arith.constant 0 : i32
    %c0_i32_0 = arith.constant 0 : i32
    return %c0_i32, %arg1 : i32, i32
  }
  func.func @transform_2(%arg0: i32, %arg1: i32) -> (i32, i32, i32) {
    %c0_i32 = arith.constant 0 : i32
    %c0_i32_0 = arith.constant 0 : i32
    return %arg0, %c0_i32, %arg1 : i32, i32, i32
  }
}

</mosaic_0001>

<bundles_post_ra>
// kernel: tpu_custom_call.1
= control target key start
LH: loop header
LB: loop body
LE: loop exit
PB: predicated region body
PF: predicated region fallthrough
CT: control target
= control target key end

     0   :  { %7 = vsyncpa [#allocation3], 0  ;;  %s903_s0 = inlined_call_operand.vmem [shape: f32[2,64,36], index: 0, kind: input, shape index: {}]   ;;  %s904_s1 = inlined_call_operand.vmem [shape: f32[36,128], index: 1, kind: input, shape index: {}]   ;;  %s905_s2 = inlined_call_operand.hbm [shape: f32[2,64,128], index: 2, kind: output, shape index: {}]  }
   0x1   :  { %9 = vsyncpa [#allocation3 + $0x1], 0  ;;  %s742_s9 = smov 0   ;;  %s744_s10 = smov 0  }
   0x2   :  { %s746_s11 = smov 0   ;;  %s748_s12 = smov 0  }
   0x3   :  { %s750_s13 = smov 0   ;;  %s752_s14 = smov 0  }
   0x4 LB: > { %s511_s15 = sadd.s32 4294967295, %s722_s14   ;;  %s512_s16 = sadd.s32 4294967294, %s722_s14   ;;  %s722_s14 = sphi %s752_s14, %s15_s14   ;;  %s718_s13 = sphi %s750_s13, %s912_s13   ;;  %s714_s12 = sphi %s748_s12, %s911_s12   ;;  %s710_s11 = sphi %s746_s11, %s910_s11   ;;  %s706_s10 = sphi %s744_s10, %s909_s10   ;;  %s702_s9 = sphi %s742_s9, %s908_s9  }
   0x5   : > { %s27_s17 = sadd.s32 1, %s718_s13  ;;  %s88_s18 = sadd.s32 1, %s710_s11 }
   0x6   : > { %p29_p0 = scmp.ge.s32.totalorder %s27_s17, 2  ;;  %p98_p1 = scmp.ne.s32.totalorder %s710_s11, %s706_s10 }
   0x7   : > { %p99_p2 = scmp.eq.s32.totalorder %s511_s15, 1  ;;  %p104_p3 = scmp.ne.s32.totalorder %s706_s10, %s702_s9 }
   0x8   : > { %s914_s17 = smov (%p29_p0, %s27_s17), 0  ;;  %p105_p5 = scmp.eq.s32.totalorder %s512_s16, 1 }
   0x9   : > { %p782_p4 = por %p99_p2, %p98_p1  ;;  %s83_s20 = ssub.s32 %s718_s13, %s914_s17 }
   0xa   : > { %p516_p6 = scmp.ge.s32.totalorder %s722_s14, 1  ;;  %p86_p7 = scmp.eq.s32.totalorder %s83_s20, 0 }
   0xb   : > { %p789_p8 = por %p105_p5, %p104_p3  ;;  %p138_p9 = scmp.lt.s32.totalorder %s722_s14, 3 }
   0xc   : > { %s795_s22 = scalar_select %p86_p7, %s710_s11, %s88_s18  }
   0xd   : > { %p139_p10 = pnand %p516_p6, %p138_p9 }
   0xe   : > { %v181_v0 = vld [vmem:[%s904_s1] sm:$0xff] (!%p139_p10)  ;;  %v182_v1 = vld [vmem:[%s904_s1 + $0x8] sm:$0xff] (!%p139_p10)  ;;  %v183_v2 = vld [vmem:[%s904_s1 + $0x10] sm:$0xff] (!%p139_p10)  ;;  %p164_p11 = scmp.lt.s32.totalorder (!%p139_p10), %s714_s12, 1  ;;  %vm186_vm0 = vcmask (!%p139_p10), 293888   ;;  %vm211_vm1 = vcmask (!%p139_p10), 1043456  }
   0xf   : > { %142 = sbr.rel (%p139_p10) target bundleno = 315 (0x13b), region = 28  ;;  %v571_v3 = vpack.c.bf16 (!%p139_p10), %v182_v1, %v181_v0  ;;  %v184_v4 = vld [vmem:[%s904_s1 + $0x18] sm:$0xff] (!%p139_p10)  ;;  %v185_v6 = vld [vmem:[%s904_s1 + $0x20] sm:$0xf] (!%p139_p10)  ;;  %s161_s16 = sand.u32 (!%p139_p10), 1, %s706_s10  }
  0x10   : > { %v575_v5 = vpack.c.bf16 (!%p139_p10), %v184_v4, %v183_v2  ;;  %s517_s18 = sshll.u32 (!%p139_p10), %s161_s16, 6  ;;  %s535_s20 = sshll.u32 (!%p139_p10), %s714_s12, 10 }
  0x11   : > { %572 = vmatprep.subr.bf16.mxu0 (!%p139_p10), %v571_v3  ;;  %579 = vmatprep.subr.bf16.mxu1 (!%p139_p10), %v571_v3  ;;  %s163_s23 = scalar_lea.vmem (!%p139_p10), [#allocation2], %s517_s18  ;;  %s857_s27 = scalar_lea.sflag (!%p139_p10), [#allocation3], %s161_s16 }
  0x12   : > { %574 = vmatpush3.bf16.msra.mxu0 (!%p139_p10), %v571_v3  ;;  %582 = vmatpush3.bf16.msra.mxu1 (!%p139_p10), %v571_v3  ;;  %s424_s24 = sshll.u32 (!%p139_p10), %s163_s23, 4  ;;  %s724_s29 = smov (!%p139_p10), [#allocation2]   ;;  %s848_s24 = int_to_ptr.vmem [resolvable:$true] %s424_s24 }
  0x13   : > { %576 = vmatprep.subr.bf16.mxu0 (!%p139_p10), %v575_v5  ;;  %580 = vmatprep.subr.bf16.mxu1 (!%p139_p10), %v575_v5  ;;  %s644_s28 = scalar_lea.vmem (!%p139_p10), %s848_s24, 1024  ;;  %s648_s30 = sshll.u32 (!%p139_p10), %s724_s29, 4  ;;  %s649_s30 = int_to_ptr.vmem [resolvable:$false] %s648_s30 }
  0x14   : > { %p645_p12 = scmp.ne.s32.totalorder (!%p139_p10), %s848_s24, %s644_s28  ;;  %p651_p1 = scmp.lt.s32.totalorder (!%p139_p10), %s848_s24, %s649_s30 }
  0x16   : > { %s165_s3 = scalar_select %p164_p11, %s714_s12, 1  ;;  %578 = vmatpush3.bf16.msra.mxu0 %v575_v5  ;;  %583 = vmatpush3.bf16.msra.mxu1 %v575_v5 }
  0x17   : > { %557 = vmatprep.subr.msk.mxu0 %vm211_vm1, %v185_v6  ;;  %581 = vmatprep.subr.msk.mxu1 %vm211_vm1, %v185_v6  ;;  %s846_s12 = scalar_lea.hbm %s905_s2, %s535_s20  ;;  %p646_p13 = pnand %p645_p12, %p782_p4 }
  0x18   : > { %s534_s4 = sshll.u32 %s165_s3, 6  ;;  %s650_s3 = scalar_lea.vmem %s649_s30, 2048 }
  0x19   : > { %s168_s7 = scalar_lea.vmem %s903_s0, %s534_s4  ;;  %p647_p0 = pneg %p646_p13 }
  0x1a   : > { %v173_v7 = vld [vmem:[%s168_s7] sm:$0xff]  ;;  %v174_v9 = vld [vmem:[%s168_s7 + $0x8] sm:$0xff]  ;;  %v175_v11 = vld [vmem:[%s168_s7 + $0x10] sm:$0xff]  ;;  %558 = vmatpush3.msk.msra.mxu0 %vm211_vm1, %v185_v6  ;;  %584 = vmatpush3.msk.msra.mxu1 %vm211_vm1, %v185_v6  ;;  %p652_p2 = scmp.lt.s32.totalorder %s650_s3, %s644_s28 }
  0x1b   : > { %559 = vmatprep.mubr.msk.f32.mxu0 %vm186_vm0, %v173_v7  ;;  %v177_v8 = vld [vmem:[%s168_s7 + $0x20] sm:$0xff]  ;;  %v178_v10 = vld [vmem:[%s168_s7 + $0x28] sm:$0xff]  ;;  %v179_v12 = vld [vmem:[%s168_s7 + $0x30] sm:$0xff] }
  0x1c   : > { %565 = vmatprep.mubr.msk.f32.mxu1 %vm186_vm0, %v177_v8  ;;  %560 = vmatmul.mubr.msk.f32.vlgmr.msra.gmra.mrb[0].mxu0 %vm186_vm0, %v174_v9  ;;  %v176_v13 = vld [vmem:[%s168_s7 + $0x18] sm:$0xff]  ;;  %p653_p3 = por %p652_p2, %p651_p1 }
  0x1d   : > { %566 = vmatmul.mubr.msk.f32.vlgmr.msra.gmra.mrb[0].mxu1 %vm186_vm0, %v178_v10  ;;  %562 = vmatprep.mubr.msk.f32.mxu0 %vm186_vm0, %v175_v11  ;;  %v180_v14 = vld [vmem:[%s168_s7 + $0x38] sm:$0xff] }
  0x1e   : > { %568 = vmatprep.mubr.msk.f32.mxu1 %vm186_vm0, %v179_v12  ;;  %p654_p5 = pnand %p653_p3, %p647_p0 }
  0x20   : > { %563 = vmatmul.mubr.msk.f32.gmra.mrb[2].mxu0 %vm186_vm0, %v176_v13 }
  0x21   : > { %569 = vmatmul.mubr.msk.f32.gmra.mrb[2].mxu1 %vm186_vm0, %v180_v14 }
  0xef   : > { %v825_v15 = vpop.f32.mrb[0].mxu0 }
  0xf0   : > { %v827_v16 = vpop.f32.mrb[0].mxu1  ;;  %v335_v17 = vmul.f32 %v825_v15, %v825_v15  ;;  %v281_v18 = vpop.f32.mrb[1].mxu0 }
  0xf1   : > { %v301_v19 = vpop.f32.mrb[1].mxu1  ;;  %v320_v20 = vadd.f32 %v825_v15, %v281_v18  ;;  %v334_v21 = vmul.f32 %v281_v18, %v281_v18  ;;  %v339_v35 = vmul.f32 %v827_v16, %v827_v16 }
  0xf2   : > { %v338_v32 = vmul.f32 %v301_v19, %v301_v19 }
  0xf3   : > { %v342_v22 = vadd.f32 %v335_v17, %v334_v21  ;;  %v564_v23 = vpop.f32.mrb[2].mxu0 }
  0xf4   : > { %v570_v24 = vpop.f32.mrb[2].mxu1  ;;  %v291_v25 = vpop.f32.mrb[3].mxu0  ;;  %v337_v29 = vmul.f32 %v564_v23, %v564_v23 }
  0xf5   : > { %v311_v26 = vpop.f32.mrb[3].mxu1  ;;  %v321_v27 = vadd.f32 %v320_v20, %v291_v25  ;;  %v336_v28 = vmul.f32 %v291_v25, %v291_v25  ;;  %v341_v41 = vmul.f32 %v570_v24, %v570_v24 }
  0xf6   : > { %v340_v38 = vmul.f32 %v311_v26, %v311_v26 }
  0xf7   : > { %v322_v30 = vadd.f32 %v564_v23, %v321_v27  ;;  %v343_v31 = vadd.f32 %v342_v22, %v336_v28 }
  0xf9   : > { %v344_v33 = vadd.f32 %v343_v31, %v337_v29  ;;  %v323_v34 = vadd.f32 %v322_v30, %v301_v19 }
  0xfb   : > { %v345_v36 = vadd.f32 %v344_v33, %v338_v32  ;;  %v324_v37 = vadd.f32 %v827_v16, %v323_v34 }
  0xfd   : > { %v325_v39 = vadd.f32 %v324_v37, %v311_v26  ;;  %v346_v40 = vadd.f32 %v345_v36, %v339_v35 }
  0xff   : > { %v326_v42 = vadd.f32 %v570_v24, %v325_v39  ;;  %v347_v43 = vadd.f32 %v346_v40, %v340_v38 }
 0x101   : > { %v327_v44 = vrot.slane %v326_v42, 4  ;;  %v348_v45 = vadd.f32 %v347_v43, %v341_v41 }
 0x103   : > { %v328_v46 = vadd.f32 %v327_v44, %v326_v42  ;;  %v349_v47 = vrot.slane %v348_v45, 4 }
 0x105   : > { %v329_v48 = vrot.slane %v328_v46, 2  ;;  %v350_v49 = vadd.f32 %v349_v47, %v348_v45 }
 0x107   : > { %v330_v50 = vadd.f32 %v329_v48, %v328_v46  ;;  %v351_v51 = vrot.slane %v350_v49, 2 }
 0x109   : > { %v331_v52 = vrot.slane %v330_v50, 1  ;;  %v352_v53 = vadd.f32 %v351_v51, %v350_v49 }
 0x10b   : > { %v332_v54 = vadd.f32 %v331_v52, %v330_v50  ;;  %v353_v55 = vrot.slane %v352_v53, 1 }
 0x10d   : > { %v333_v56 = vmul.f32 0.015625, %v332_v54  ;;  %v354_v57 = vadd.f32 %v353_v55, %v352_v53 }
 0x10f   : > { %v355_v58 = vmul.f32 0.015625, %v354_v57  ;;  %v356_v59 = vmul.f32 %v333_v56, %v333_v56  ;;  %v365_v60 = vsub.f32 %v311_v26, %v333_v56  ;;  %v359_v61 = vsub.f32 %v281_v18, %v333_v56 }
 0x110   : > { %v360_v62 = vsub.f32 %v825_v15, %v333_v56  ;;  %v361_v63 = vsub.f32 %v291_v25, %v333_v56  ;;  %v362_v0 = vsub.f32 %v564_v23, %v333_v56  ;;  %v363_v1 = vsub.f32 %v301_v19, %v333_v56 }
 0x111   : > { %v357_v2 = vsub.f32 %v355_v58, %v356_v59  ;;  %v364_v3 = vsub.f32 %v827_v16, %v333_v56  ;;  %v366_v4 = vsub.f32 %v570_v24, %v333_v56 }
 0x113   : > { %v358_v5 = vmax.f32 %v357_v2, 0.0 }
 0x115   : > { %v367_v6 = vadd.f32 1e-05, %v358_v5 }
 0x117   : > { %642 = vrsqrt.f32 %v367_v6 }
 0x121   : > { %v643_v7 = vpop.eup %642 }
 0x122   : > { %v375_v8 = vmul.f32 %v643_v7, %v365_v60  ;;  %v369_v9 = vmul.f32 %v643_v7, %v359_v61  ;;  %v370_v10 = vmul.f32 %v643_v7, %v360_v62  ;;  %v371_v11 = vmul.f32 %v643_v7, %v361_v63 }
 0x123   : > { %v372_v12 = vmul.f32 %v643_v7, %v362_v0  ;;  %v373_v13 = vmul.f32 %v643_v7, %v363_v1  ;;  %v374_v14 = vmul.f32 %v643_v7, %v364_v3  ;;  %v376_v15 = vmul.f32 %v643_v7, %v366_v4 }
 0x124   : > { %vm383_vm2 = vcmp.gt.f32.partialorder %v375_v8, 0.0  ;;  %v391_v17 = vmul.f32 0.2, %v375_v8  ;;  %vm377_vm3 = vcmp.gt.f32.partialorder %v369_v9, 0.0  ;;  %vm378_vm4 = vcmp.gt.f32.partialorder %v370_v10, 0.0 }
 0x125   : > { %vm379_vm5 = vcmp.gt.f32.partialorder %v371_v11, 0.0  ;;  %vm380_vm6 = vcmp.gt.f32.partialorder %v372_v12, 0.0  ;;  %vm381_vm7 = vcmp.gt.f32.partialorder %v373_v13, 0.0  ;;  %vm382_vm8 = vcmp.gt.f32.partialorder %v374_v14, 0.0 }
 0x126   : > { %v399_v16 = vsel %vm383_vm2, %v375_v8, %v391_v17  ;;  %vm384_vm9 = vcmp.gt.f32.partialorder %v376_v15, 0.0  ;;  %v385_v18 = vmul.f32 0.2, %v369_v9  ;;  %v386_v19 = vmul.f32 0.2, %v370_v10 }
 0x127   : > { %407 = vst [vmem:[%s163_s23 + $0x30] sm:$0xff] %v399_v16  ;;  %v387_v20 = vmul.f32 0.2, %v371_v11  ;;  %v388_v21 = vmul.f32 0.2, %v372_v12 }
 0x128   : > { %v389_v22 = vmul.f32 0.2, %v373_v13  ;;  %v390_v23 = vmul.f32 0.2, %v374_v14  ;;  %v392_v24 = vmul.f32 0.2, %v376_v15  ;;  %v393_v25 = vsel %vm377_vm3, %v369_v9, %v385_v18 }
 0x129   : > { %v394_v26 = vsel %vm378_vm4, %v370_v10, %v386_v19  ;;  %v395_v27 = vsel %vm379_vm5, %v371_v11, %v387_v20  ;;  %v396_v28 = vsel %vm380_vm6, %v372_v12, %v388_v21  ;;  %401 = vst [vmem:[%s163_s23] sm:$0xff] %v393_v25 }
 0x12a   : > { %v397_v29 = vsel %vm381_vm7, %v373_v13, %v389_v22  ;;  %402 = vst [vmem:[%s163_s23 + $0x8] sm:$0xff] %v394_v26  ;;  %v398_v30 = vsel %vm382_vm8, %v374_v14, %v390_v23  ;;  %v400_v31 = vsel %vm384_vm9, %v376_v15, %v392_v24  ;;  %403 = vst [vmem:[%s163_s23 + $0x10] sm:$0xff] %v395_v27 }
 0x12b   : > { %404 = vst [vmem:[%s163_s23 + $0x18] sm:$0xff] %v396_v28  ;;  %405 = vst [vmem:[%s163_s23 + $0x20] sm:$0xff] %v397_v29 }
 0x12c   : > { %406 = vst [vmem:[%s163_s23 + $0x28] sm:$0xff] %v398_v30  ;;  %408 = vst [vmem:[%s163_s23 + $0x38] sm:$0xff] %v400_v31 }
 0x12d   : > { %657 = shalt.err (!%p654_p5)
}
 0x12e   : > { %s658_s4 = scalar_lea.hbm %s846_s12, 1024  ;;  %s662_s7 = scalar_lea.hbm %s905_s2, 2048 }
 0x12f   : > { %p659_p6 = scmp.ne.s32.totalorder %s846_s12, %s658_s4  ;;  %p663_p10 = scmp.lt.u32.totalorder %s846_s12, %s905_s2 }
 0x130   : > { %p664_p11 = scmp.lt.u32.totalorder %s662_s7, %s658_s4  ;;  %p666_p13 = scmp.lt.u32.totalorder %s658_s4, %s846_s12 }
 0x131   : > { %p660_p7 = pnand %p659_p6, %p782_p4 }
 0x132   : > { %p665_p12 = por %p664_p11, %p663_p10 }
 0x133   : > { %p661_p9 = pneg %p660_p7 }
 0x134   : > { %p667_p0 = por %p666_p13, %p665_p12 }
 0x136   : > { %p668_p1 = pnand %p667_p0, %p661_p9 }
 0x138   : > { %671 = shalt.err (!%p668_p1)
}
 0x139   : > { %s725_s16 = smov 128   ;;  %s726_s18 = smov 8  }
 0x13a   : > { %585 = dma.vmem_to_hbm [thread:$0]  (%p782_p4), %s848_s24, 1024, %s846_s12, %s857_s27, %s725_s16, %s725_s16, %s726_s18  }
 0x13b PF: > { %p591_p2 = scmp.ge.s32.totalorder %s722_s14, 2  ;;  %s439_s20 = sand.u32 1, %s702_s9  }
 0x13c   : > { %s440_s23 = scalar_lea.sflag [#allocation3], %s439_s20 }
 0x13d   : > { %p588_p3 = pnand %p591_p2, %p789_p8 }
 0x13f   : > { %697 = dma.done.wait (!%p588_p3), %s440_s23, 1024  }
 0x140   : > { %699 = vsyncadd (!%p588_p3), %s440_s23, 4294966272  ;;  %s15_s14 = sadd.s32 1, %s722_s14   ;;  %s908_s9 = smov %s706_s10 }
 0x141   : > { %p12_p5 = scmp.ge.s32.totalorder %s15_s14, 4   ;;  %s909_s10 = smov %s710_s11 }
 0x142   : > { %s910_s11 = smov %s795_s22  ;;  %s911_s12 = smov %s718_s13 }
 0x143   : > { %s912_s13 = smov %s914_s17  ;;  %14 = sbr.rel (!%p12_p5) target bundleno = 4 (0x4), region = 66 }
 0x14a   :  { %445 = vsyncpa [#allocation3], 1 }
 0x14b   :  { %447 = vsyncpa [#allocation3 + $0x1], 1 }

</bundles_post_ra>
